<compile_context>
chip_gen: v7x
topology: tpu7x:2x2x1
jax: 0.10.0
libtpu: 0.0.40
codegen_flags: <defaults>
</compile_context>

<pallas_src>
import jax
import jax.numpy as jnp
from jax.experimental import pallas as pl
from jax.experimental.pallas import tpu as pltpu


def _dy_nconv_kernel(x_ref, a_ref, o_ref):
    # x_ref: (1, C, V, Lt)   a_ref: (1, V, W, Lt)   o_ref: (1, C, W, Lt)
    # out[c, w, l] = sum_v x[c, v, l] * a[v, w, l]
    C, V, Lt = x_ref.shape[1], x_ref.shape[2], x_ref.shape[3]
    W = a_ref.shape[2]

    acc = jnp.zeros((C, W, Lt), jnp.float32)

    # Static, sublane-friendly chunks over the contraction axis V bound the
    # (C, vc, W, Lt) broadcast intermediate.  The reduction axis (vc) is a
    # leading (non-tiled) axis of the product, so the sum is plain vreg adds
    # on the VPU — no XLU work, and the lane axis (Lt) stays dense throughout.
    vc = min(8, V)
    for v0 in range(0, V, vc):
        v1 = min(v0 + vc, V)
        xv = x_ref[0, :, v0:v1, :].astype(jnp.float32)   # (C, vc, Lt)
        av = a_ref[0, v0:v1, :, :].astype(jnp.float32)   # (vc, W, Lt)
        # (C, vc, 1, Lt) * (1, vc, W, Lt) -> (C, vc, W, Lt); reduce over vc.
        acc = acc + jnp.sum(xv[:, :, None, :] * av[None, :, :, :], axis=1)

    o_ref[0] = acc.astype(o_ref.dtype)


def _pick_l_tile(L, bytes_per_l, vmem_budget_bytes):
    """Largest l-tile that divides L exactly and fits the VMEM budget.

    Block-shape rule: the minor-most block dim must be a multiple of 128 or the
    full array dim.  So: whole L when L is not a 128-multiple (no padding ever),
    else the biggest 128-multiple divisor whose double-buffered blocks fit.
    """
    if L % 128 != 0:
        return L
    best = 128
    lt = 128
    while lt <= L:
        if L % lt == 0 and 2 * bytes_per_l * lt <= vmem_budget_bytes:
            best = lt
        lt += 128
    return best


def dy_nconv_forward(x, A, *, vmem_budget_bytes=24 * 1024 * 1024):
    """Pallas implementation of torch.einsum('ncvl,nvwl->ncwl', (x, A))."""
    N, C, V, L = x.shape
    Na, Va, W, La = A.shape
    assert (N, V, L) == (Na, Va, La), "x / A shape mismatch"

    out_dtype = jnp.promote_types(x.dtype, A.dtype)
    itemsize = max(
        jnp.dtype(x.dtype).itemsize,
        jnp.dtype(A.dtype).itemsize,
        jnp.dtype(out_dtype).itemsize,
    )
    # Bytes of (x + A + out) blocks per unit of L — used to size the l-tile so
    # the double-buffered working set stays inside the per-generation budget
    # (24 MiB default is safe on v7x's 64 MiB VMEM and generous on v5e/v6e).
    bytes_per_l = (C * V + V * W + C * W) * itemsize
    Lt = _pick_l_tile(L, bytes_per_l, vmem_budget_bytes)

    grid = (N, L // Lt)

    flops = 2 * N * C * V * W * L
    bytes_accessed = (
        N * C * V * L * jnp.dtype(x.dtype).itemsize
        + N * V * W * L * jnp.dtype(A.dtype).itemsize
        + N * C * W * L * jnp.dtype(out_dtype).itemsize
    )

    return pl.pallas_call(
        _dy_nconv_kernel,
        out_shape=jax.ShapeDtypeStruct((N, C, W, L), out_dtype),
        grid_spec=pltpu.PrefetchScalarGridSpec(
            num_scalar_prefetch=0,
            grid=grid,
            in_specs=[
                pl.BlockSpec((1, C, V, Lt), lambda n, l: (n, 0, 0, l)),
                pl.BlockSpec((1, V, W, Lt), lambda n, l: (n, 0, 0, l)),
            ],
            out_specs=pl.BlockSpec((1, C, W, Lt), lambda n, l: (n, 0, 0, l)),
        ),
        compiler_params=pltpu.CompilerParams(
            # Both grid axes are independent -> let megacore (v7x) split them.
            dimension_semantics=("parallel", "parallel"),
            vmem_limit_bytes=48 * 1024 * 1024,
        ),
        cost_estimate=pl.CostEstimate(
            flops=flops, transcendentals=0, bytes_accessed=bytes_accessed
        ),
    )(x, A)


def _reference_forward(x, A):
    """Pure-JAX reference mirroring torch.einsum('ncvl,nvwl->ncwl', (x, A))."""
    return jnp.einsum("ncvl,nvwl->ncwl", x, A)


if __name__ == "__main__":
    # Small deterministic shapes implied by the forward:
    #   batch N=2, channels C=4, nodes V=W=16, seq L=8
    N, C, V, W, L = 2, 4, 16, 16, 8

    key = jax.random.PRNGKey(0)
    kx, ka = jax.random.split(key)
    x = jax.random.normal(kx, (N, C, V, L), jnp.float32)
    A = jax.random.normal(ka, (N, V, W, L), jnp.float32)

    out = dy_nconv_forward(x, A)
    out = jax.block_until_ready(out)

    ref = _reference_forward(x, A)
    assert out.shape == (N, C, W, L), f"bad shape {out.shape}"
    assert jnp.allclose(out, ref, atol=1e-4, rtol=1e-4), "mismatch vs reference"

    print("KERNEL_OK")
</pallas_src>

<mosaic_0001>
module attributes {stable_mosaic.version = 11 : i64} {
  func.func @_dy_nconv_kernel(%arg0: i32, %arg1: i32, %arg2: memref<1x4x16x8xf32, #tpu.memory_space<vmem>>, %arg3: memref<1x16x16x8xf32, #tpu.memory_space<vmem>>, %arg4: memref<1x4x16x8xf32, #tpu.memory_space<vmem>>) attributes {dimension_semantics = [#tpu.dimension_semantics<parallel>, #tpu.dimension_semantics<parallel>], iteration_bounds = array<i64: 2, 1>, scalar_prefetch = 0 : i64, scratch_operands = 0 : i64, tpu.core_type = #tpu.core_type<tc>, window_params = [{transform_indices = @transform_0, window_bounds = array<i64: 1, 4, 16, 8>}, {transform_indices = @transform_1, window_bounds = array<i64: 1, 16, 16, 8>}, {transform_indices = @transform_2, window_bounds = array<i64: 1, 4, 16, 8>}]} {
    %cst = arith.constant 0.000000e+00 : f32
    %0 = vector.broadcast %cst : f32 to vector<4x16x8xf32>
    %c0 = arith.constant 0 : index
    %c0_0 = arith.constant 0 : index
    %c0_1 = arith.constant 0 : index
    %c0_2 = arith.constant 0 : index
    %1 = vector.load %arg2[%c0, %c0_0, %c0_1, %c0_2] : memref<1x4x16x8xf32, #tpu.memory_space<vmem>>, vector<1x4x8x8xf32>
    %2 = vector.shape_cast %1 : vector<1x4x8x8xf32> to vector<4x8x8xf32>
    %c0_3 = arith.constant 0 : index
    %c0_4 = arith.constant 0 : index
    %c0_5 = arith.constant 0 : index
    %c0_6 = arith.constant 0 : index
    %3 = vector.load %arg3[%c0_3, %c0_4, %c0_5, %c0_6] : memref<1x16x16x8xf32, #tpu.memory_space<vmem>>, vector<1x8x16x8xf32>
    %4 = vector.shape_cast %3 : vector<1x8x16x8xf32> to vector<8x16x8xf32>
    %5 = vector.shape_cast %2 : vector<4x8x8xf32> to vector<4x8x1x8xf32>
    %6 = vector.shape_cast %4 : vector<8x16x8xf32> to vector<1x8x16x8xf32>
    %7 = vector.broadcast %5 : vector<4x8x1x8xf32> to vector<4x8x16x8xf32>
    %8 = vector.broadcast %6 : vector<1x8x16x8xf32> to vector<4x8x16x8xf32>
    %9 = arith.mulf %7, %8 : vector<4x8x16x8xf32>
    %cst_7 = arith.constant dense<0.000000e+00> : vector<4x16x8xf32>
    %10 = vector.multi_reduction <add>, %9, %cst_7 [1] : vector<4x8x16x8xf32> to vector<4x16x8xf32>
    %11 = arith.addf %0, %10 : vector<4x16x8xf32>
    %c0_8 = arith.constant 0 : index
    %c0_9 = arith.constant 0 : index
    %c8 = arith.constant 8 : index
    %c0_10 = arith.constant 0 : index
    %12 = vector.load %arg2[%c0_8, %c0_9, %c8, %c0_10] : memref<1x4x16x8xf32, #tpu.memory_space<vmem>>, vector<1x4x8x8xf32>
    %13 = vector.shape_cast %12 : vector<1x4x8x8xf32> to vector<4x8x8xf32>
    %c0_11 = arith.constant 0 : index
    %c8_12 = arith.constant 8 : index
    %c0_13 = arith.constant 0 : index
    %c0_14 = arith.constant 0 : index
    %14 = vector.load %arg3[%c0_11, %c8_12, %c0_13, %c0_14] : memref<1x16x16x8xf32, #tpu.memory_space<vmem>>, vector<1x8x16x8xf32>
    %15 = vector.shape_cast %14 : vector<1x8x16x8xf32> to vector<8x16x8xf32>
    %16 = vector.shape_cast %13 : vector<4x8x8xf32> to vector<4x8x1x8xf32>
    %17 = vector.shape_cast %15 : vector<8x16x8xf32> to vector<1x8x16x8xf32>
    %18 = vector.broadcast %16 : vector<4x8x1x8xf32> to vector<4x8x16x8xf32>
    %19 = vector.broadcast %17 : vector<1x8x16x8xf32> to vector<4x8x16x8xf32>
    %20 = arith.mulf %18, %19 : vector<4x8x16x8xf32>
    %cst_15 = arith.constant dense<0.000000e+00> : vector<4x16x8xf32>
    %21 = vector.multi_reduction <add>, %20, %cst_15 [1] : vector<4x8x16x8xf32> to vector<4x16x8xf32>
    %22 = arith.addf %11, %21 : vector<4x16x8xf32>
    %c0_16 = arith.constant 0 : index
    %c0_17 = arith.constant 0 : index
    %c0_18 = arith.constant 0 : index
    %c0_19 = arith.constant 0 : index
    %23 = vector.load %arg4[%c0_16, %c0_17, %c0_18, %c0_19] : memref<1x4x16x8xf32, #tpu.memory_space<vmem>>, vector<1x4x16x8xf32>
    %24 = vector.shape_cast %23 : vector<1x4x16x8xf32> to vector<4x16x8xf32>
    %25 = vector.shape_cast %22 : vector<4x16x8xf32> to vector<1x4x16x8xf32>
    tpu.vector_store %arg4[%c0_16, %c0_17, %c0_18, %c0_19], %25 {strides = array<i32>} : memref<1x4x16x8xf32, #tpu.memory_space<vmem>>, vector<1x4x16x8xf32>,
    return
  }
  func.func @transform_0(%arg0: i32, %arg1: i32) -> (i32, i32, i32, i32) {
    %c0_i32 = arith.constant 0 : i32
    %c0_i32_0 = arith.constant 0 : i32
    %c0_i32_1 = arith.constant 0 : i32
    return %arg0, %c0_i32, %c0_i32_0, %arg1 : i32, i32, i32, i32
  }
  func.func @transform_1(%arg0: i32, %arg1: i32) -> (i32, i32, i32, i32) {
    %c0_i32 = arith.constant 0 : i32
    %c0_i32_0 = arith.constant 0 : i32
    %c0_i32_1 = arith.constant 0 : i32
    return %arg0, %c0_i32, %c0_i32_0, %arg1 : i32, i32, i32, i32
  }
  func.func @transform_2(%arg0: i32, %arg1: i32) -> (i32, i32, i32, i32) {
    %c0_i32 = arith.constant 0 : i32
    %c0_i32_0 = arith.constant 0 : i32
    %c0_i32_1 = arith.constant 0 : i32
    return %arg0, %c0_i32, %c0_i32_0, %arg1 : i32, i32, i32, i32
  }
}

</mosaic_0001>

<bundles_post_ra>
// kernel: tpu_custom_call.1
= control target key start
LH: loop header
LB: loop body
LE: loop exit
PB: predicated region body
PF: predicated region fallthrough
CT: control target
= control target key end

     0   :  { %s1566_s9 = smov 0   ;;  %s1568_s10 = smov 0   ;;  %s2606_s0 = inlined_call_operand.vmem [shape: f32[2,4,16,8], index: 0, kind: input, shape index: {}]   ;;  %s2607_s1 = inlined_call_operand.vmem [shape: f32[2,16,16,8], index: 1, kind: input, shape index: {}]   ;;  %s2608_s2 = inlined_call_operand.vmem [shape: f32[2,4,16,8], index: 2, kind: output, shape index: {}]  }
   0x1   :  { %s1570_s11 = smov 0  }
   0x2 LB: > { %s24_s12 = sadd.s32 1, %s1544_s10  ;;  %p1465_p0 = scmp.ge.s32.totalorder %s1548_s11, 1  ;;  %s1548_s11 = sphi %s1570_s11, %s12_s11   ;;  %s1544_s10 = sphi %s1568_s10, %s2692_s10   ;;  %s1540_s9 = sphi %s1566_s9, %s2691_s9  }
   0x3   : > { %p26_p1 = scmp.ge.s32.totalorder %s24_s12, 2  ;;  %p146_p2 = scmp.lt.s32.totalorder %s1548_s11, 3 }
   0x5   : > { %s2694_s12 = smov (%p26_p1, %s24_s12), 0  ;;  %p147_p3 = pnand %p1465_p0, %p146_p2 }
   0x7   : > { %150 = sbr.rel (%p147_p3) target bundleno = 167 (0xa7), region = 28 }
   0xe   : > { %p182_p4 = scmp.lt.s32.totalorder %s1540_s9, 1  ;;  %v234_v0 = vlaneseq  ;;  %v1550_v1 = vmov 1966171168   ;;  %vm650_vm0 = vcmask 64512  }
   0xf   : > { %v232_v2 = vunpack.c.l.s4 %v1550_v1 }
  0x10   : > { %s2696_s9 = smov (!%p182_p4, %s1540_s9), 1  ;;  %v235_v3 = vshrl.u32 %v234_v0, 7 }
  0x11   : > { %v233_v4 = vunpack.c.0.s8 %v232_v2  ;;  %s1490_s13 = sshll.u32 %s2696_s9, 6  ;;  %s1491_s17 = sshll.u32 %s2696_s9, 8 }
  0x12   : > { %s1592_s16 = scalar_lea.vmem %s2606_s0, %s1490_s13  ;;  %v1610_v29 = vsub.s32 0, %v235_v3  ;;  %s1634_s20 = scalar_lea.vmem %s2607_s1, %s1491_s17 }
  0x13   : > { %v1594_v5 = vsub.s32 %v233_v4, %v235_v3  ;;  %v206_v6 = vld [vmem:[%s1592_s16] sm:$0xff]  ;;  %v207_v7 = vld [vmem:[%s1592_s16 + $0x10] sm:$0xff]  ;;  %s2550_s23 = scalar_lea.vmem %s2608_s2, %s1490_s13 }
  0x14   : > { %v208_v8 = vld [vmem:[%s1592_s16 + $0x20] sm:$0xff]  ;;  %v230_v9 = vcombine.high %v206_v6, %v206_v6  ;;  %v279_v11 = vcombine.high %v207_v7, %v207_v7  ;;  %v209_v14 = vld [vmem:[%s1592_s16 + $0x30] sm:$0xff]  ;;  %2614 = vst [vmem:[#allocation3_spill] sm:$0xff] %v1610_v29 }
  0x15   : > { %2613 = vst [vmem:[#allocation2_spill] sm:$0xff] %v1594_v5  ;;  %v237_v10 = vrot.slane %v206_v6, %v1594_v5  ;;  %v286_v12 = vrot.slane %v207_v7, %v1594_v5  ;;  %v328_v13 = vcombine.high %v208_v8, %v208_v8  ;;  %v335_v17 = vrot.slane %v208_v8, %v1594_v5 }
  0x16   : > { %v244_v15 = vrot.slane %v230_v9, %v1594_v5  ;;  %v293_v16 = vrot.slane %v279_v11, %v1594_v5  ;;  %v377_v24 = vcombine.high %v209_v14, %v209_v14  ;;  %v384_v25 = vrot.slane %v209_v14, %v1594_v5 }
  0x17   : > { %v245_v18 = vcombine.high %v237_v10, %v237_v10  ;;  %v253_v19 = vrot.slane %v237_v10, %v1594_v5  ;;  %v342_v20 = vrot.slane %v328_v13, %v1594_v5  ;;  %v294_v22 = vcombine.high %v286_v12, %v286_v12 }
  0x18   : > { %v246_v21 = vcombine.high %v244_v15, %v244_v15  ;;  %v302_v23 = vrot.slane %v286_v12, %v1594_v5  ;;  %v260_v26 = vrot.slane %v244_v15, %v1594_v5  ;;  %v295_v27 = vcombine.high %v293_v16, %v293_v16  ;;  %v1652_v15 = vld [vmem:[%s1634_s20] sm:$0xff] }
  0x19   : > { %v343_v28 = vcombine.high %v335_v17, %v335_v17  ;;  %v267_v30 = vrot.slane %v245_v18, %v1594_v5  ;;  %v275_v31 = vcombine.high %v253_v19, %v253_v19  ;;  %v309_v32 = vrot.slane %v293_v16, %v1594_v5  ;;  %v1655_v16 = vld [vmem:[%s1634_s20 + $0x8] sm:$0xff] }
  0x1a   : > { %v344_v33 = vcombine.high %v342_v20, %v342_v20  ;;  %v274_v34 = vrot.slane %v246_v21, %v1594_v5  ;;  %v316_v35 = vrot.slane %v294_v22, %v1594_v5  ;;  %v324_v36 = vcombine.high %v302_v23, %v302_v23  ;;  %v1671_v22 = vld [vmem:[%s1634_s20 + $0x18] sm:$0xff] }
  0x1b   : > { %v351_v37 = vrot.slane %v335_v17, %v1594_v5  ;;  %v276_v38 = vcombine.high %v260_v26, %v260_v26  ;;  %v277_v39 = vcombine.high %v267_v30, %v267_v30  ;;  %v391_v40 = vrot.slane %v377_v24, %v1594_v5  ;;  %v1658_v17 = vld [vmem:[%s1634_s20 + $0x10] sm:$0xff]  ;;  %v1677_v24 = vld [vmem:[%s1634_s20 + $0x28] sm:$0xff] }
  0x1c   : > { %v392_v41 = vcombine.high %v384_v25, %v384_v25  ;;  %v323_v42 = vrot.slane %v295_v27, %v1594_v5  ;;  %v325_v43 = vcombine.high %v309_v32, %v309_v32  ;;  %v358_v44 = vrot.slane %v342_v20, %v1594_v5 }
  0x1d   : > { %v400_v45 = vrot.slane %v384_v25, %v1594_v5  ;;  %v326_v46 = vcombine.high %v316_v35, %v316_v35  ;;  %v365_v47 = vrot.slane %v343_v28, %v1594_v5  ;;  %v372_v48 = vrot.slane %v344_v33, %v1594_v5 }
  0x1e   : > { %v393_v49 = vcombine.high %v391_v40, %v391_v40  ;;  %v278_v50 = vcombine.high %v274_v34, %v274_v34  ;;  %v327_v51 = vcombine.high %v323_v42, %v323_v42  ;;  %v373_v52 = vcombine.high %v351_v37, %v351_v37 }
  0x1f   : > { %v374_v53 = vcombine.high %v358_v44, %v358_v44  ;;  %v375_v54 = vcombine.high %v365_v47, %v365_v47  ;;  %v376_v55 = vcombine.high %v372_v48, %v372_v48  ;;  %v407_v56 = vrot.slane %v391_v40, %v1594_v5 }
  0x20   : > { %v414_v57 = vrot.slane %v392_v41, %v1594_v5  ;;  %v422_v58 = vcombine.high %v400_v45, %v400_v45  ;;  %v429_v59 = vrot.slane %v253_v19, %v1610_v29  ;;  %v433_v60 = vrot.slane %v267_v30, %v1610_v29  ;;  %v1692_v30 = vld [vmem:[%s1634_s20 + $0x30] sm:$0xff] }
  0x21   : > { %v437_v61 = vrot.slane %v275_v31, %v1610_v29  ;;  %v421_v62 = vrot.slane %v393_v49, %v1594_v5  ;;  %v423_v63 = vcombine.high %v407_v56, %v407_v56  ;;  %v441_v1 = vrot.slane %v277_v39, %v1610_v29  ;;  %v1695_v31 = vld [vmem:[%s1634_s20 + $0x38] sm:$0xff] }
  0x22   : > { %v424_v0 = vcombine.high %v414_v57, %v414_v57  ;;  %v445_v2 = vrot.slane %v260_v26, %v1610_v29  ;;  %v449_v3 = vrot.slane %v274_v34, %v1610_v29  ;;  %v453_v4 = vrot.slane %v276_v38, %v1610_v29  ;;  %v1716_v38 = vld [vmem:[%s1634_s20 + $0x50] sm:$0xff]  ;;  %v1719_v39 = vld [vmem:[%s1634_s20 + $0x58] sm:$0xff] }
  0x23   : > { %v457_v6 = vrot.slane %v278_v50, %v1610_v29  ;;  %v425_v7 = vcombine.high %v421_v62, %v421_v62  ;;  %v461_v8 = vrot.slane %v302_v23, %v1610_v29  ;;  %v465_v9 = vrot.slane %v316_v35, %v1610_v29  ;;  %v1674_v23 = vld [vmem:[%s1634_s20 + $0x20] sm:$0xff] }
  0x24   : > { %v469_v10 = vrot.slane %v324_v36, %v1610_v29  ;;  %v473_v11 = vrot.slane %v326_v46, %v1610_v29  ;;  %v477_v12 = vrot.slane %v309_v32, %v1610_v29  ;;  %v1646_v13 = vrot.slane %v323_v42, %v1610_v29  ;;  %v1698_v32 = vld [vmem:[%s1634_s20 + $0x40] sm:$0xff]  ;;  %v1740_v46 = vld [vmem:[%s1634_s20 + $0x70] sm:$0xff] }
  0x25   : > { %v1649_v14 = vrot.slane %v325_v43, %v1610_v29  ;;  %v489_v18 = vrot.slane %v327_v51, %v1610_v29  ;;  %v1662_v19 = vrot.slane %v351_v37, %v1610_v29  ;;  %v1665_v20 = vrot.slane %v365_v47, %v1610_v29  ;;  %v1713_v37 = vld [vmem:[%s1634_s20 + $0x48] sm:$0xff]  ;;  %v1751_v51 = vld [vmem:[%s1634_s20 + $0x78] sm:$0xff] }
  0x26   : > { %v1668_v21 = vrot.slane %v373_v52, %v1610_v29  ;;  %v1680_v25 = vrot.slane %v375_v54, %v1610_v29  ;;  %v1683_v26 = vrot.slane %v358_v44, %v1610_v29  ;;  %v1686_v27 = vrot.slane %v372_v48, %v1610_v29  ;;  %v1734_v44 = vld [vmem:[%s1634_s20 + $0x60] sm:$0xff] }
  0x27   : > { %v1689_v28 = vrot.slane %v374_v53, %v1610_v29  ;;  %v1701_v33 = vrot.slane %v376_v55, %v1610_v29  ;;  %v1704_v34 = vrot.slane %v400_v45, %v1610_v29  ;;  %v1707_v35 = vrot.slane %v414_v57, %v1610_v29  ;;  %v1737_v45 = vld [vmem:[%s1634_s20 + $0x68] sm:$0xff] }
  0x28   : > { %v1710_v36 = vrot.slane %v422_v58, %v1610_v29  ;;  %v1722_v40 = vrot.slane %v424_v0, %v1610_v29  ;;  %v1725_v41 = vrot.slane %v407_v56, %v1610_v29  ;;  %v1728_v42 = vrot.slane %v421_v62, %v1610_v29 }
  0x29   : > { %v1731_v43 = vrot.slane %v423_v63, %v1610_v29  ;;  %v1743_v47 = vrot.slane %v425_v7, %v1610_v29  ;;  %v586_v48 = vmul.f32 %v429_v59, %v1652_v15  ;;  %v1747_v49 = vmul.f32 %v429_v59, %v1655_v16 }
  0x2a   : > { %v588_v50 = vmul.f32 %v433_v60, %v1658_v17  ;;  %v1754_v52 = vmul.f32 %v433_v60, %v1671_v22  ;;  %v590_v53 = vmul.f32 %v437_v61, %v1674_v23  ;;  %v591_v54 = vmul.f32 %v437_v61, %v1677_v24 }
  0x2b   : > { %v592_v55 = vmul.f32 %v441_v1, %v1692_v30  ;;  %v1760_v56 = vmul.f32 %v441_v1, %v1695_v31  ;;  %v1763_v57 = vmul.f32 %v445_v2, %v1698_v32  ;;  %v1766_v58 = vmul.f32 %v445_v2, %v1713_v37 }
  0x2c   : > { %v1769_v59 = vmul.f32 %v449_v3, %v1716_v38  ;;  %v1772_v60 = vmul.f32 %v449_v3, %v1719_v39  ;;  %v1775_v62 = vmul.f32 %v453_v4, %v1734_v44  ;;  %v1778_v61 = vmul.f32 %v453_v4, %v1737_v45 }
  0x2d   : > { %v1781_v63 = vmul.f32 %v457_v6, %v1740_v46  ;;  %v1784_v0 = vmul.f32 %v457_v6, %v1751_v51  ;;  %v602_v1 = vmul.f32 %v461_v8, %v1652_v15  ;;  %v1788_v2 = vmul.f32 %v461_v8, %v1655_v16 }
  0x2e   : > { %2615 = vst [vmem:[#allocation4_spill] sm:$0xff] %v1778_v61  ;;  %v604_v3 = vmul.f32 %v465_v9, %v1658_v17  ;;  %v1792_v7 = vmul.f32 %v465_v9, %v1671_v22  ;;  %v606_v4 = vmul.f32 %v469_v10, %v1674_v23  ;;  %v1796_v29 = vmul.f32 %v469_v10, %v1677_v24 }
  0x2f   : > { %2616 = vst [vmem:[#allocation5_spill] sm:$0xff] %v1781_v63  ;;  %2617 = vst [vmem:[#allocation6_spill] sm:$0xff] %v1784_v0  ;;  %v1799_v5 = vmul.f32 %v473_v11, %v1692_v30  ;;  %v1802_v6 = vmul.f32 %v473_v11, %v1695_v31  ;;  %v1805_v0 = vmul.f32 %v477_v12, %v1698_v32 }
  0x30   : > { %v1808_v8 = vmul.f32 %v477_v12, %v1713_v37  ;;  %v1812_v9 = vmul.f32 %v1646_v13, %v1716_v38  ;;  %v1816_v10 = vmul.f32 %v1646_v13, %v1719_v39  ;;  %v1820_v61 = vmul.f32 %v1649_v14, %v1734_v44 }
  0x31   : > { %v1824_v11 = vmul.f32 %v1649_v14, %v1737_v45  ;;  %v1827_v63 = vmul.f32 %v489_v18, %v1740_v46  ;;  %v1830_v12 = vmul.f32 %v489_v18, %v1751_v51  ;;  %v1838_v13 = vmul.f32 %v1662_v19, %v1655_v16 }
  0x32   : > { %2618 = vst [vmem:[#allocation7_spill] sm:$0xff] %v1808_v8  ;;  %2619 = vst [vmem:[#allocation8_spill] sm:$0xff] %v1816_v10  ;;  %v1834_v8 = vmul.f32 %v1662_v19, %v1652_v15  ;;  %v1842_v10 = vmul.f32 %v1665_v20, %v1658_v17  ;;  %v1846_v14 = vmul.f32 %v1665_v20, %v1671_v22 }
  0x33   : > { %2620 = vst [vmem:[#allocation9_spill] sm:$0xff] %v1824_v11  ;;  %2621 = vst [vmem:[#allocation10_spill] sm:$0xff] %v1830_v12  ;;  %v1850_v18 = vmul.f32 %v1668_v21, %v1674_v23  ;;  %v1854_v12 = vmul.f32 %v1668_v21, %v1677_v24  ;;  %v1858_v19 = vmul.f32 %v1680_v25, %v1692_v30 }
  0x34   : > { %2622 = vst [vmem:[#allocation11_spill] sm:$0xff] %v1846_v14  ;;  %v1862_v11 = vmul.f32 %v1680_v25, %v1695_v31  ;;  %v1866_v20 = vmul.f32 %v1683_v26, %v1698_v32  ;;  %v1870_v14 = vmul.f32 %v1683_v26, %v1713_v37  ;;  %v1874_v21 = vmul.f32 %v1686_v27, %v1716_v38 }
  0x35   : > { %2623 = vst [vmem:[#allocation12_spill] sm:$0xff] %v1854_v12  ;;  %v1878_v12 = vmul.f32 %v1686_v27, %v1719_v39  ;;  %v1882_v25 = vmul.f32 %v1689_v28, %v1734_v44  ;;  %v1890_v26 = vmul.f32 %v1701_v33, %v1740_v46  ;;  %v1898_v27 = vmul.f32 %v1704_v34, %v1652_v15 }
  0x36   : > { %2624 = vst [vmem:[#allocation13_spill] sm:$0xff] %v1862_v11  ;;  %2625 = vst [vmem:[#allocation14_spill] sm:$0xff] %v1870_v14  ;;  %v1886_v11 = vmul.f32 %v1689_v28, %v1737_v45  ;;  %v1894_v14 = vmul.f32 %v1701_v33, %v1751_v51  ;;  %v1906_v28 = vmul.f32 %v1707_v35, %v1658_v17 }
  0x37   : > { %2626 = vst [vmem:[#allocation15_spill] sm:$0xff] %v1878_v12  ;;  %v1902_v12 = vmul.f32 %v1704_v34, %v1655_v16  ;;  %v1914_v33 = vmul.f32 %v1710_v36, %v1674_v23  ;;  %v1918_v15 = vmul.f32 %v1710_v36, %v1677_v24  ;;  %v1922_v16 = vmul.f32 %v1722_v40, %v1692_v30 }
  0x38   : > { %2627 = vst [vmem:[#allocation16_spill] sm:$0xff] %v1886_v11  ;;  %v1910_v11 = vmul.f32 %v1707_v35, %v1671_v22  ;;  %v1926_v17 = vmul.f32 %v1722_v40, %v1695_v31  ;;  %v651_v34 = vsel %vm650_vm0, %v586_v48, 0.0  ;;  %v652_v22 = vsel %vm650_vm0, %v588_v50, 0.0 }
  0x39   : > { %v654_v35 = vsel %vm650_vm0, %v590_v53, 0.0  ;;  %v1933_v23 = vmul.f32 %v1725_v41, %v1698_v32  ;;  %v1937_v24 = vmul.f32 %v1725_v41, %v1713_v37  ;;  %v1941_v30 = vmul.f32 %v1728_v42, %v1716_v38 }
  0x3a   : > { %v653_v31 = vadd.f32 %v652_v22, %v651_v34  ;;  %v656_v36 = vsel %vm650_vm0, %v592_v55, 0.0  ;;  %v666_v40 = vsel %vm650_vm0, %v1747_v49, 0.0  ;;  %v667_v48 = vsel %vm650_vm0, %v1754_v52, 0.0 }
  0x3b   : > { %v669_v32 = vsel %vm650_vm0, %v591_v54, 0.0  ;;  %v1951_v50 = vmul.f32 %v1728_v42, %v1719_v39  ;;  %v1955_v37 = vmul.f32 %v1731_v43, %v1734_v44  ;;  %v668_v41 = vadd.f32 %v667_v48, %v666_v40  ;;  %v2629_v48 = vld [vmem:[#allocation5_spill] sm:$0xff] }
  0x3c   : > { %v655_v38 = vadd.f32 %v654_v35, %v653_v31  ;;  %v1959_v53 = vmul.f32 %v1731_v43, %v1737_v45  ;;  %v658_v49 = vsel %vm650_vm0, %v1763_v57, 0.0  ;;  %v671_v52 = vsel %vm650_vm0, %v1760_v56, 0.0 }
  0x3d   : > { %v681_v54 = vsel %vm650_vm0, %v602_v1, 0.0  ;;  %v670_v42 = vadd.f32 %v669_v32, %v668_v41  ;;  %v682_v55 = vsel %vm650_vm0, %v604_v3, 0.0  ;;  %v684_v44 = vsel %vm650_vm0, %v606_v4, 0.0 }
  0x3e   : > { %v657_v39 = vadd.f32 %v656_v36, %v655_v38  ;;  %v1970_v34 = vmul.f32 %v1743_v47, %v1740_v46  ;;  %v660_v43 = vsel %vm650_vm0, %v1769_v59, 0.0  ;;  %v673_v45 = vsel %vm650_vm0, %v1766_v58, 0.0 }
  0x3f   : > { %v683_v57 = vadd.f32 %v682_v55, %v681_v54  ;;  %v672_v22 = vadd.f32 %v671_v52, %v670_v42  ;;  %v675_v1 = vsel %vm650_vm0, %v1772_v60, 0.0  ;;  %v686_v3 = vsel %vm650_vm0, %v1799_v5, 0.0  ;;  %v2631_v52 = vld [vmem:[#allocation6_spill] sm:$0xff] }
  0x40   : > { %v659_v56 = vadd.f32 %v658_v49, %v657_v39  ;;  %v696_v46 = vsel %vm650_vm0, %v1788_v2, 0.0  ;;  %v697_v35 = vsel %vm650_vm0, %v1792_v7, 0.0  ;;  %v699_v59 = vsel %vm650_vm0, %v1796_v29, 0.0  ;;  %v2630_v49 = vld [vmem:[#allocation4_spill] sm:$0xff] }
  0x41   : > { %v685_v4 = vadd.f32 %v684_v44, %v683_v57  ;;  %v1988_v58 = vmul.f32 %v1743_v47, %v1751_v51  ;;  %v674_v31 = vadd.f32 %v673_v45, %v672_v22  ;;  %v688_v60 = vsel %vm650_vm0, %v1805_v0, 0.0  ;;  %v2632_v44 = vld [vmem:[#allocation7_spill] sm:$0xff]  ;;  %v2633_v45 = vld [vmem:[#allocation8_spill] sm:$0xff] }
  0x42   : > { %v698_v36 = vadd.f32 %v697_v35, %v696_v46  ;;  %v661_v5 = vadd.f32 %v660_v43, %v659_v56  ;;  %v662_v40 = vsel %vm650_vm0, %v1775_v62, 0.0  ;;  %v701_v7 = vsel %vm650_vm0, %v1802_v6, 0.0 }
  0x43   : > { %2628 = vst [vmem:[#allocation17_spill] sm:$0xff] %v1988_v58  ;;  %v687_v2 = vadd.f32 %v686_v3, %v685_v4  ;;  %v664_v29 = vsel %vm650_vm0, %v2629_v48, 0.0  ;;  %v676_v32 = vadd.f32 %v675_v1, %v674_v31  ;;  %v690_v47 = vsel %vm650_vm0, %v1812_v9, 0.0  ;;  %v2634_v3 = vld [vmem:[#allocation11_spill] sm:$0xff]  ;;  %v2239_v58 = vld [vmem:[%s1634_s20 + $0xf8] sm:$0xff] }
  0x44   : > { %v700_v51 = vadd.f32 %v699_v59, %v698_v36  ;;  %v711_v0 = vsel %vm650_vm0, %v1834_v8, 0.0  ;;  %v712_v41 = vsel %vm650_vm0, %v1842_v10, 0.0  ;;  %v714_v62 = vsel %vm650_vm0, %v1850_v18, 0.0  ;;  %v2635_v59 = vld [vmem:[#allocation12_spill] sm:$0xff] }
  0x45   : > { %v689_v38 = vadd.f32 %v688_v60, %v687_v2  ;;  %v677_v6 = vsel %vm650_vm0, %v2630_v49, 0.0  ;;  %v679_v54 = vsel %vm650_vm0, %v2631_v52, 0.0  ;;  %v713_v42 = vadd.f32 %v712_v41, %v711_v0  ;;  %v2637_v60 = vld [vmem:[#allocation9_spill] sm:$0xff] }
  0x46   : > { %v702_v39 = vadd.f32 %v701_v7, %v700_v51  ;;  %v663_v9 = vadd.f32 %v662_v40, %v661_v5  ;;  %v692_v55 = vsel %vm650_vm0, %v1820_v61, 0.0  ;;  %v703_v8 = vsel %vm650_vm0, %v2632_v44, 0.0  ;;  %v2638_v5 = vld [vmem:[#allocation10_spill] sm:$0xff]  ;;  %v2639_v40 = vld [vmem:[#allocation13_spill] sm:$0xff] }
  0x47   : > { %v716_v10 = vsel %vm650_vm0, %v1858_v19, 0.0  ;;  %v691_v43 = vadd.f32 %v690_v47, %v689_v38  ;;  %v694_v18 = vsel %vm650_vm0, %v1827_v63, 0.0  ;;  %v705_v57 = vsel %vm650_vm0, %v2633_v45, 0.0  ;;  %v2640_v47 = vld [vmem:[#allocation14_spill] sm:$0xff]  ;;  %v780_v45 = vld [vmem:[%s1592_s16 + $0x18] sm:$0xff] }
  0x48   : > { %v715_v56 = vadd.f32 %v714_v62, %v713_v42  ;;  %v678_v22 = vadd.f32 %v677_v6, %v676_v32  ;;  %v718_v1 = vsel %vm650_vm0, %v1866_v20, 0.0  ;;  %v726_v61 = vsel %vm650_vm0, %v1838_v13, 0.0 }
  0x49   : > { %v727_v4 = vsel %vm650_vm0, %v2634_v3, 0.0  ;;  %v704_v46 = vadd.f32 %v703_v8, %v702_v39  ;;  %v729_v63 = vsel %vm650_vm0, %v2635_v59, 0.0  ;;  %v2028_v31 = vadd.f32 %v664_v29, %v663_v9  ;;  %v2642_v39 = vld [vmem:[#allocation15_spill] sm:$0xff] }
  0x4a   : > { %v717_v19 = vadd.f32 %v716_v10, %v715_v56  ;;  %v728_v35 = vadd.f32 %v727_v4, %v726_v61  ;;  %v707_v36 = vsel %vm650_vm0, %v2637_v60, 0.0  ;;  %v709_v20 = vsel %vm650_vm0, %v2638_v5, 0.0  ;;  %v2645_v4 = vld [vmem:[#allocation2_spill] sm:$0xff] }
  0x4b   : > { %2636 = vst [vmem:[#allocation5_spill] sm:$0xff] %v2028_v31  ;;  %v731_v13 = vsel %vm650_vm0, %v2639_v40, 0.0  ;;  %v693_v2 = vadd.f32 %v692_v55, %v691_v43  ;;  %v720_v48 = vsel %vm650_vm0, %v1874_v21, 0.0  ;;  %v733_v51 = vsel %vm650_vm0, %v2640_v47, 0.0 }
  0x4c   : > { %v719_v7 = vadd.f32 %v718_v1, %v717_v19  ;;  %v730_v32 = vadd.f32 %v729_v63, %v728_v35  ;;  %v741_v29 = vsel %vm650_vm0, %v1898_v27, 0.0  ;;  %v742_v38 = vsel %vm650_vm0, %v1906_v28, 0.0 }
  0x4d   : > { %v744_v0 = vsel %vm650_vm0, %v1914_v33, 0.0  ;;  %v2046_v41 = vadd.f32 %v679_v54, %v678_v22  ;;  %v706_v62 = vadd.f32 %v705_v57, %v704_v46  ;;  %v743_v6 = vadd.f32 %v742_v38, %v741_v29  ;;  %v2644_v57 = vld [vmem:[#allocation16_spill] sm:$0xff] }
  0x4e   : > { %v732_v49 = vadd.f32 %v731_v13, %v730_v32  ;;  %v722_v21 = vsel %vm650_vm0, %v1882_v25, 0.0  ;;  %v724_v52 = vsel %vm650_vm0, %v1890_v26, 0.0  ;;  %v735_v27 = vsel %vm650_vm0, %v2642_v39, 0.0 }
  0x4f   : > { %2641 = vst [vmem:[#allocation4_spill] sm:$0xff] %v2046_v41  ;;  %v746_v28 = vsel %vm650_vm0, %v1922_v16, 0.0  ;;  %v2056_v33 = vadd.f32 %v694_v18, %v693_v2  ;;  %v721_v54 = vadd.f32 %v720_v48, %v719_v7  ;;  %v745_v9 = vadd.f32 %v744_v0, %v743_v6  ;;  %v779_v18 = vld [vmem:[%s1592_s16 + $0x8] sm:$0xff] }
  0x50   : > { %v734_v42 = vadd.f32 %v733_v51, %v732_v49  ;;  %v748_v55 = vsel %vm650_vm0, %v1933_v23, 0.0  ;;  %v756_v25 = vsel %vm650_vm0, %v1902_v12, 0.0  ;;  %v757_v26 = vsel %vm650_vm0, %v1910_v11, 0.0 }
  0x51   : > { %2643 = vst [vmem:[#allocation6_spill] sm:$0xff] %v2056_v33  ;;  %v759_v44 = vsel %vm650_vm0, %v1918_v15, 0.0  ;;  %v708_v8 = vadd.f32 %v707_v36, %v706_v62  ;;  %v747_v16 = vadd.f32 %v746_v28, %v745_v9  ;;  %v758_v43 = vadd.f32 %v757_v26, %v756_v25 }
  0x52   : > { %v736_v10 = vadd.f32 %v735_v27, %v734_v42  ;;  %v737_v56 = vsel %vm650_vm0, %v2644_v57, 0.0  ;;  %v739_v23 = vsel %vm650_vm0, %v1894_v14, 0.0  ;;  %v750_v12 = vsel %vm650_vm0, %v1941_v30, 0.0 }
  0x53   : > { %v761_v11 = vsel %vm650_vm0, %v1926_v17, 0.0  ;;  %v723_v22 = vadd.f32 %v722_v21, %v721_v54  ;;  %v749_v15 = vadd.f32 %v748_v55, %v747_v16  ;;  %v760_v1 = vadd.f32 %v759_v44, %v758_v43 }
  0x54   : > { %v804_v61 = vcombine.high %v779_v18, %v779_v18  ;;  %v763_v3 = vsel %vm650_vm0, %v1937_v24, 0.0  ;;  %v811_v46 = vrot.slane %v779_v18, %v2645_v4  ;;  %v853_v19 = vcombine.high %v780_v45, %v780_v45 }
  0x55   : > { %v860_v35 = vrot.slane %v780_v45, %v2645_v4  ;;  %v2080_v14 = vadd.f32 %v709_v20, %v708_v8  ;;  %v738_v59 = vadd.f32 %v737_v56, %v736_v10  ;;  %v762_v30 = vadd.f32 %v761_v11, %v760_v1  ;;  %v781_v20 = vld [vmem:[%s1592_s16 + $0x28] sm:$0xff] }
  0x56   : > { %v818_v63 = vrot.slane %v804_v61, %v2645_v4  ;;  %v751_v17 = vadd.f32 %v750_v12, %v749_v15  ;;  %v819_v60 = vcombine.high %v811_v46, %v811_v46  ;;  %v827_v36 = vrot.slane %v811_v46, %v2645_v4  ;;  %v2653_v1 = vld [vmem:[#allocation3_spill] sm:$0xff] }
  0x57   : > { %2646 = vst [vmem:[#allocation7_spill] sm:$0xff] %v2080_v14  ;;  %v867_v5 = vrot.slane %v853_v19, %v2645_v4  ;;  %v752_v24 = vsel %vm650_vm0, %v1955_v37, 0.0  ;;  %v2089_v40 = vsel %vm650_vm0, %v1970_v34, 0.0  ;;  %v764_v13 = vadd.f32 %v763_v3, %v762_v30 }
  0x58   : > { %2647 = vst [vmem:[#allocation8_spill] sm:$0xff] %v2089_v40  ;;  %v820_v2 = vcombine.high %v818_v63, %v818_v63  ;;  %v2092_v7 = vadd.f32 %v724_v52, %v723_v22  ;;  %v765_v48 = vsel %vm650_vm0, %v1951_v50, 0.0  ;;  %v868_v32 = vcombine.high %v860_v35, %v860_v35  ;;  %v782_v50 = vld [vmem:[%s1592_s16 + $0x38] sm:$0xff] }
  0x59   : > { %v902_v47 = vcombine.high %v781_v20, %v781_v20  ;;  %v2096_v51 = vadd.f32 %v739_v23, %v738_v59  ;;  %v2100_v37 = vsel %vm650_vm0, %v1959_v53, 0.0  ;;  %v834_v34 = vrot.slane %v818_v63, %v2645_v4 }
  0x5a   : > { %2648 = vst [vmem:[#allocation11_spill] sm:$0xff] %v2092_v7  ;;  %2650 = vst [vmem:[#allocation9_spill] sm:$0xff] %v2100_v37  ;;  %v869_v29 = vcombine.high %v867_v5, %v867_v5  ;;  %v2103_v38 = vadd.f32 %v752_v24, %v751_v17  ;;  %v841_v0 = vrot.slane %v819_v60, %v2645_v4 }
  0x5b   : > { %2649 = vst [vmem:[#allocation12_spill] sm:$0xff] %v2096_v51  ;;  %v849_v62 = vcombine.high %v827_v36, %v827_v36  ;;  %v876_v49 = vrot.slane %v860_v35, %v2645_v4  ;;  %v2107_v6 = vadd.f32 %v765_v48, %v764_v13  ;;  %v848_v21 = vrot.slane %v820_v2, %v2645_v4 }
  0x5c   : > { %2651 = vst [vmem:[#allocation10_spill] sm:$0xff] %v2103_v38  ;;  %v850_v52 = vcombine.high %v834_v34, %v834_v34  ;;  %v909_v39 = vrot.slane %v781_v20, %v2645_v4  ;;  %v851_v53 = vcombine.high %v841_v0, %v841_v0  ;;  %v883_v27 = vrot.slane %v867_v5, %v2645_v4 }
  0x5d   : > { %2652 = vst [vmem:[#allocation13_spill] sm:$0xff] %v2107_v6  ;;  %v890_v28 = vrot.slane %v868_v32, %v2645_v4  ;;  %v916_v54 = vrot.slane %v902_v47, %v2645_v4  ;;  %v897_v42 = vrot.slane %v869_v29, %v2645_v4  ;;  %v951_v25 = vcombine.high %v782_v50, %v782_v50 }
  0x5e   : > { %v917_v9 = vcombine.high %v909_v39, %v909_v39  ;;  %v925_v55 = vrot.slane %v909_v39, %v2645_v4  ;;  %v852_v26 = vcombine.high %v848_v21, %v848_v21  ;;  %v898_v44 = vcombine.high %v876_v49, %v876_v49 }
  0x5f   : > { %v918_v8 = vcombine.high %v916_v54, %v916_v54  ;;  %v958_v10 = vrot.slane %v782_v50, %v2645_v4  ;;  %v899_v16 = vcombine.high %v883_v27, %v883_v27  ;;  %v900_v43 = vcombine.high %v890_v28, %v890_v28 }
  0x60   : > { %v901_v18 = vcombine.high %v897_v42, %v897_v42  ;;  %v965_v45 = vrot.slane %v951_v25, %v2645_v4  ;;  %v932_v57 = vrot.slane %v916_v54, %v2645_v4  ;;  %v939_v56 = vrot.slane %v917_v9, %v2645_v4  ;;  %v2161_v54 = vld [vmem:[%s1634_s20 + $0x98] sm:$0xff]  ;;  %v2167_v9 = vld [vmem:[%s1634_s20 + $0xa8] sm:$0xff] }
  0x61   : > { %v966_v23 = vcombine.high %v958_v10, %v958_v10  ;;  %v974_v12 = vrot.slane %v958_v10, %v2645_v4  ;;  %v946_v11 = vrot.slane %v918_v8, %v2645_v4  ;;  %v947_v22 = vcombine.high %v925_v55, %v925_v55  ;;  %v2180_v8 = vld [vmem:[%s1634_s20 + $0xb0] sm:$0xff]  ;;  %v2183_v10 = vld [vmem:[%s1634_s20 + $0xb8] sm:$0xff] }
  0x62   : > { %v967_v15 = vcombine.high %v965_v45, %v965_v45  ;;  %v1003_v61 = vrot.slane %v827_v36, %v2653_v1  ;;  %v948_v3 = vcombine.high %v932_v57, %v932_v57  ;;  %v949_v46 = vcombine.high %v939_v56, %v939_v56 }
  0x63   : > { %v981_v19 = vrot.slane %v965_v45, %v2645_v4  ;;  %v1007_v35 = vrot.slane %v841_v0, %v2653_v1  ;;  %v950_v59 = vcombine.high %v946_v11, %v946_v11  ;;  %v988_v30 = vrot.slane %v966_v23, %v2645_v4  ;;  %v2204_v23 = vld [vmem:[%s1634_s20 + $0xd0] sm:$0xff] }
  0x64   : > { %v996_v63 = vcombine.high %v974_v12, %v974_v12  ;;  %v1011_v17 = vrot.slane %v849_v62, %v2653_v1  ;;  %v995_v60 = vrot.slane %v967_v15, %v2645_v4  ;;  %v1015_v24 = vrot.slane %v851_v53, %v2653_v1 }
  0x65   : > { %v997_v5 = vcombine.high %v981_v19, %v981_v19  ;;  %v1019_v36 = vrot.slane %v834_v34, %v2653_v1  ;;  %v998_v13 = vcombine.high %v988_v30, %v988_v30  ;;  %v1023_v20 = vrot.slane %v848_v21, %v2653_v1  ;;  %v2144_v21 = vld [vmem:[%s1634_s20 + $0x80] sm:$0xff] }
  0x66   : > { %v1027_v2 = vrot.slane %v850_v52, %v2653_v1  ;;  %v1031_v48 = vrot.slane %v852_v26, %v2653_v1  ;;  %v999_v32 = vcombine.high %v995_v60, %v995_v60  ;;  %v1035_v4 = vrot.slane %v876_v49, %v2653_v1  ;;  %v2147_v49 = vld [vmem:[%s1634_s20 + $0x88] sm:$0xff]  ;;  %v2150_v52 = vld [vmem:[%s1634_s20 + $0x90] sm:$0xff] }
  0x67   : > { %v1039_v47 = vrot.slane %v890_v28, %v2653_v1  ;;  %v1043_v29 = vrot.slane %v898_v44, %v2653_v1  ;;  %v1047_v0 = vrot.slane %v900_v43, %v2653_v1  ;;  %v1051_v34 = vrot.slane %v883_v27, %v2653_v1 }
  0x68   : > { %v1055_v62 = vrot.slane %v897_v42, %v2653_v1  ;;  %v2141_v50 = vrot.slane %v899_v16, %v2653_v1  ;;  %v1063_v39 = vrot.slane %v901_v18, %v2653_v1  ;;  %v1067_v53 = vrot.slane %v925_v55, %v2653_v1  ;;  %v2164_v42 = vld [vmem:[%s1634_s20 + $0xa0] sm:$0xff] }
  0x69   : > { %v2155_v27 = vrot.slane %v939_v56, %v2653_v1  ;;  %v2158_v28 = vrot.slane %v947_v22, %v2653_v1  ;;  %v1079_v25 = vrot.slane %v949_v46, %v2653_v1  ;;  %v2171_v26 = vrot.slane %v932_v57, %v2653_v1  ;;  %v2186_v16 = vld [vmem:[%s1634_s20 + $0xc0] sm:$0xff]  ;;  %v2201_v56 = vld [vmem:[%s1634_s20 + $0xc8] sm:$0xff] }
  0x6a   : > { %v2174_v55 = vrot.slane %v946_v11, %v2653_v1  ;;  %v2177_v44 = vrot.slane %v948_v3, %v2653_v1  ;;  %v2189_v43 = vrot.slane %v950_v59, %v2653_v1  ;;  %v2192_v18 = vrot.slane %v974_v12, %v2653_v1  ;;  %v2207_v11 = vld [vmem:[%s1634_s20 + $0xd8] sm:$0xff]  ;;  %v2222_v46 = vld [vmem:[%s1634_s20 + $0xe0] sm:$0xff]  ;;  %v2225_v59 = vld [vmem:[%s1634_s20 + $0xe8] sm:$0xff] }
  0x6b   : > { %v2195_v45 = vrot.slane %v988_v30, %v2653_v1  ;;  %v2198_v57 = vrot.slane %v996_v63, %v2653_v1  ;;  %v2210_v22 = vrot.slane %v998_v13, %v2653_v1  ;;  %v2213_v15 = vrot.slane %v981_v19, %v2653_v1  ;;  %v2228_v30 = vld [vmem:[%s1634_s20 + $0xf0] sm:$0xff] }
  0x6c   : > { %v2216_v12 = vrot.slane %v995_v60, %v2653_v1  ;;  %v2219_v3 = vrot.slane %v997_v5, %v2653_v1  ;;  %v2231_v63 = vrot.slane %v999_v32, %v2653_v1  ;;  %v1160_v13 = vmul.f32 %v2144_v21, %v1003_v61 }
  0x6d   : > { %v2235_v19 = vmul.f32 %v2147_v49, %v1003_v61  ;;  %v1162_v60 = vmul.f32 %v2150_v52, %v1007_v35  ;;  %v2242_v5 = vmul.f32 %v2161_v54, %v1007_v35  ;;  %v1164_v51 = vmul.f32 %v2164_v42, %v1011_v17 }
  0x6e   : > { %v2246_v37 = vmul.f32 %v2167_v9, %v1011_v17  ;;  %v1166_v1 = vmul.f32 %v2180_v8, %v1015_v24  ;;  %v2250_v32 = vmul.f32 %v2183_v10, %v1015_v24  ;;  %v2253_v61 = vmul.f32 %v2186_v16, %v1019_v36 }
  0x6f   : > { %v2256_v6 = vmul.f32 %v2201_v56, %v1019_v36  ;;  %v2259_v40 = vmul.f32 %v2204_v23, %v1023_v20  ;;  %v2262_v35 = vmul.f32 %v2207_v11, %v1023_v20  ;;  %v2265_v17 = vmul.f32 %v2222_v46, %v1027_v2 }
  0x70   : > { %v2268_v38 = vmul.f32 %v2225_v59, %v1027_v2  ;;  %v1174_v24 = vmul.f32 %v2228_v30, %v1031_v48  ;;  %v2272_v7 = vmul.f32 %v2239_v58, %v1031_v48  ;;  %v1176_v36 = vmul.f32 %v2144_v21, %v1035_v4 }
  0x71   : > { %v2276_v14 = vmul.f32 %v2147_v49, %v1035_v4  ;;  %v2279_v33 = vmul.f32 %v2150_v52, %v1039_v47  ;;  %v2282_v20 = vmul.f32 %v2161_v54, %v1039_v47  ;;  %v1180_v41 = vmul.f32 %v2164_v42, %v1043_v29 }
  0x72   : > { %v2286_v2 = vmul.f32 %v2167_v9, %v1043_v29  ;;  %v2289_v31 = vmul.f32 %v2180_v8, %v1047_v0  ;;  %v2292_v48 = vmul.f32 %v2183_v10, %v1047_v0  ;;  %v2295_v4 = vmul.f32 %v2186_v16, %v1051_v34 }
  0x73   : > { %2654 = vst [vmem:[#allocation14_spill] sm:$0xff] %v2276_v14  ;;  %2655 = vst [vmem:[#allocation15_spill] sm:$0xff] %v2282_v20  ;;  %v2298_v14 = vmul.f32 %v2201_v56, %v1051_v34  ;;  %v2301_v47 = vmul.f32 %v2204_v23, %v1055_v62  ;;  %v2304_v20 = vmul.f32 %v2207_v11, %v1055_v62 }
  0x74   : > { %2656 = vst [vmem:[#allocation16_spill] sm:$0xff] %v2292_v48  ;;  %v2308_v29 = vmul.f32 %v2222_v46, %v2141_v50  ;;  %v2312_v0 = vmul.f32 %v2225_v59, %v2141_v50  ;;  %v2315_v48 = vmul.f32 %v2228_v30, %v1063_v39  ;;  %v2318_v34 = vmul.f32 %v2239_v58, %v1063_v39 }
  0x75   : > { %2657 = vst [vmem:[#allocation2_spill] sm:$0xff] %v2298_v14  ;;  %2658 = vst [vmem:[#allocation3_spill] sm:$0xff] %v2304_v20  ;;  %v2321_v14 = vmul.f32 %v2144_v21, %v1067_v53  ;;  %v2324_v62 = vmul.f32 %v2147_v49, %v1067_v53  ;;  %v2328_v20 = vmul.f32 %v2150_v52, %v2155_v27 }
  0x76   : > { %2659 = vst [vmem:[#allocation18_spill] sm:$0xff] %v2312_v0  ;;  %2660 = vst [vmem:[#allocation19_spill] sm:$0xff] %v2318_v34  ;;  %v2332_v50 = vmul.f32 %v2161_v54, %v2155_v27  ;;  %v2336_v0 = vmul.f32 %v2164_v42, %v2158_v28  ;;  %v2340_v39 = vmul.f32 %v2167_v9, %v2158_v28 }
  0x77   : > { %2661 = vst [vmem:[#allocation20_spill] sm:$0xff] %v2324_v62  ;;  %v2343_v34 = vmul.f32 %v2180_v8, %v1079_v25  ;;  %v2346_v53 = vmul.f32 %v2183_v10, %v1079_v25  ;;  %v2350_v62 = vmul.f32 %v2186_v16, %v2171_v26  ;;  %v2354_v27 = vmul.f32 %v2201_v56, %v2171_v26 }
  0x78   : > { %2662 = vst [vmem:[#allocation21_spill] sm:$0xff] %v2332_v50  ;;  %v2358_v50 = vmul.f32 %v2204_v23, %v2174_v55  ;;  %v2362_v28 = vmul.f32 %v2207_v11, %v2174_v55  ;;  %v2366_v25 = vmul.f32 %v2222_v46, %v2177_v44  ;;  %v2374_v26 = vmul.f32 %v2228_v30, %v2189_v43 }
  0x79   : > { %2663 = vst [vmem:[#allocation22_spill] sm:$0xff] %v2346_v53  ;;  %2664 = vst [vmem:[#allocation23_spill] sm:$0xff] %v2354_v27  ;;  %v2370_v53 = vmul.f32 %v2225_v59, %v2177_v44  ;;  %v2378_v27 = vmul.f32 %v2239_v58, %v2189_v43  ;;  %v2382_v55 = vmul.f32 %v2144_v21, %v2192_v18 }
  0x7a   : > { %2665 = vst [vmem:[#allocation24_spill] sm:$0xff] %v2362_v28  ;;  %v2386_v28 = vmul.f32 %v2147_v49, %v2192_v18  ;;  %v2390_v44 = vmul.f32 %v2150_v52, %v2195_v45  ;;  %v2398_v43 = vmul.f32 %v2164_v42, %v2198_v57  ;;  %v2402_v21 = vmul.f32 %v2167_v9, %v2198_v57 }
  0x7b   : > { %2666 = vst [vmem:[#allocation25_spill] sm:$0xff] %v2370_v53  ;;  %v2394_v53 = vmul.f32 %v2161_v54, %v2195_v45  ;;  %v2406_v49 = vmul.f32 %v2180_v8, %v2210_v22  ;;  %v2410_v52 = vmul.f32 %v2183_v10, %v2210_v22  ;;  %v2414_v54 = vmul.f32 %v2186_v16, %v2213_v15 }
  0x7c   : > { %v2418_v42 = vmul.f32 %v2201_v56, %v2213_v15  ;;  %v2422_v9 = vmul.f32 %v2204_v23, %v2216_v12  ;;  %v2426_v8 = vmul.f32 %v2207_v11, %v2216_v12  ;;  %v1224_v18 = vsel %vm650_vm0, %v1160_v13, 0.0 }
  0x7d   : > { %v1225_v10 = vsel %vm650_vm0, %v1162_v60, 0.0  ;;  %v1227_v45 = vsel %vm650_vm0, %v1164_v51, 0.0  ;;  %v2433_v16 = vmul.f32 %v2222_v46, %v2219_v3  ;;  %v2437_v57 = vmul.f32 %v2225_v59, %v2219_v3 }
  0x7e   : > { %v2441_v56 = vmul.f32 %v2228_v30, %v2231_v63  ;;  %v1226_v23 = vadd.f32 %v1225_v10, %v1224_v18  ;;  %v1229_v11 = vsel %vm650_vm0, %v1166_v1, 0.0  ;;  %v1239_v22 = vsel %vm650_vm0, %v2235_v19, 0.0 }
  0x7f   : > { %v1240_v51 = vsel %vm650_vm0, %v2242_v5, 0.0  ;;  %v1242_v15 = vsel %vm650_vm0, %v2246_v37, 0.0  ;;  %v1231_v3 = vsel %vm650_vm0, %v2253_v61, 0.0  ;;  %v1233_v46 = vsel %vm650_vm0, %v2259_v40, 0.0 }
  0x80   : > { %v1228_v12 = vadd.f32 %v1227_v45, %v1226_v23  ;;  %v1241_v59 = vadd.f32 %v1240_v51, %v1239_v22  ;;  %v1235_v30 = vsel %vm650_vm0, %v2265_v17, 0.0  ;;  %v1237_v13 = vsel %vm650_vm0, %v1174_v24, 0.0 }
  0x81   : > { %v1244_v19 = vsel %vm650_vm0, %v2250_v32, 0.0  ;;  %v1254_v60 = vsel %vm650_vm0, %v1176_v36, 0.0  ;;  %v1255_v1 = vsel %vm650_vm0, %v2279_v33, 0.0  ;;  %v1257_v61 = vsel %vm650_vm0, %v1180_v41, 0.0  ;;  %v2667_v41 = vld [vmem:[#allocation14_spill] sm:$0xff] }
  0x82   : > { %v1230_v5 = vadd.f32 %v1229_v11, %v1228_v12  ;;  %v1243_v37 = vadd.f32 %v1242_v15, %v1241_v59  ;;  %v1246_v40 = vsel %vm650_vm0, %v2256_v6, 0.0  ;;  %v1248_v17 = vsel %vm650_vm0, %v2262_v35, 0.0  ;;  %v2668_v6 = vld [vmem:[#allocation15_spill] sm:$0xff] }
  0x83   : > { %v1250_v24 = vsel %vm650_vm0, %v2268_v38, 0.0  ;;  %v1256_v18 = vadd.f32 %v1255_v1, %v1254_v60  ;;  %v1252_v36 = vsel %vm650_vm0, %v2272_v7, 0.0  ;;  %v1259_v33 = vsel %vm650_vm0, %v2289_v31, 0.0 }
  0x84   : > { %v1232_v32 = vadd.f32 %v1231_v3, %v1230_v5  ;;  %v1245_v10 = vadd.f32 %v1244_v19, %v1243_v37  ;;  %v1269_v23 = vsel %vm650_vm0, %v2667_v41, 0.0  ;;  %v1270_v11 = vsel %vm650_vm0, %v2668_v6, 0.0  ;;  %v2669_v3 = vld [vmem:[#allocation16_spill] sm:$0xff]  ;;  %v2673_v41 = vld [vmem:[#allocation19_spill] sm:$0xff] }
  0x85   : > { %v1258_v45 = vadd.f32 %v1257_v61, %v1256_v18  ;;  %v1272_v35 = vsel %vm650_vm0, %v2286_v2, 0.0  ;;  %v1261_v51 = vsel %vm650_vm0, %v2295_v4, 0.0  ;;  %v1271_v15 = vadd.f32 %v1270_v11, %v1269_v23  ;;  %v2670_v2 = vld [vmem:[#allocation2_spill] sm:$0xff]  ;;  %v2674_v11 = vld [vmem:[#allocation20_spill] sm:$0xff] }
  0x86   : > { %v1234_v38 = vadd.f32 %v1233_v46, %v1232_v32  ;;  %v1247_v22 = vadd.f32 %v1246_v40, %v1245_v10  ;;  %v1263_v31 = vsel %vm650_vm0, %v2301_v47, 0.0  ;;  %v1265_v12 = vsel %vm650_vm0, %v2308_v29, 0.0  ;;  %v2672_v10 = vld [vmem:[#allocation18_spill] sm:$0xff] }
  0x87   : > { %v1260_v7 = vadd.f32 %v1259_v33, %v1258_v45  ;;  %v1274_v59 = vsel %vm650_vm0, %v2669_v3, 0.0  ;;  %v1273_v5 = vadd.f32 %v1272_v35, %v1271_v15  ;;  %v1276_v46 = vsel %vm650_vm0, %v2670_v2, 0.0  ;;  %v2675_v35 = vld [vmem:[#allocation21_spill] sm:$0xff] }
  0x88   : > { %v1236_v19 = vadd.f32 %v1235_v30, %v1234_v38  ;;  %v1249_v60 = vadd.f32 %v1248_v17, %v1247_v22  ;;  %v1284_v4 = vsel %vm650_vm0, %v2321_v14, 0.0  ;;  %v1285_v1 = vsel %vm650_vm0, %v2328_v20, 0.0  ;;  %v2671_v30 = vld [vmem:[#allocation3_spill] sm:$0xff] }
  0x89   : > { %v1262_v37 = vadd.f32 %v1261_v51, %v1260_v7  ;;  %v1287_v47 = vsel %vm650_vm0, %v2336_v0, 0.0  ;;  %v1267_v29 = vsel %vm650_vm0, %v2315_v48, 0.0  ;;  %v1275_v61 = vadd.f32 %v1274_v59, %v1273_v5  ;;  %v2677_v5 = vld [vmem:[#allocation23_spill] sm:$0xff] }
  0x8a   : > { %v1278_v40 = vsel %vm650_vm0, %v2671_v30, 0.0  ;;  %v1286_v17 = vadd.f32 %v1285_v1, %v1284_v4  ;;  %v1251_v18 = vadd.f32 %v1250_v24, %v1249_v60  ;;  %v1280_v33 = vsel %vm650_vm0, %v2672_v10, 0.0  ;;  %v2678_v1 = vld [vmem:[#allocation24_spill] sm:$0xff] }
  0x8b   : > { %v1264_v32 = vadd.f32 %v1263_v31, %v1262_v37  ;;  %v1289_v14 = vsel %vm650_vm0, %v2343_v34, 0.0  ;;  %v1238_v20 = vadd.f32 %v1237_v13, %v1236_v19  ;;  %v1277_v45 = vadd.f32 %v1276_v46, %v1275_v61 }
  0x8c   : > { %v1282_v0 = vsel %vm650_vm0, %v2673_v41, 0.0  ;;  %v1288_v23 = vadd.f32 %v1287_v47, %v1286_v17  ;;  %v1291_v6 = vsel %vm650_vm0, %v2350_v62, 0.0  ;;  %v1299_v24 = vsel %vm650_vm0, %v2674_v11, 0.0  ;;  %v2676_v62 = vld [vmem:[#allocation22_spill] sm:$0xff]  ;;  %v2679_v47 = vld [vmem:[#allocation25_spill] sm:$0xff] }
  0x8d   : > { %v1266_v48 = vadd.f32 %v1265_v12, %v1264_v32  ;;  %v1300_v38 = vsel %vm650_vm0, %v2675_v35, 0.0  ;;  %v1279_v22 = vadd.f32 %v1278_v40, %v1277_v45  ;;  %v1302_v34 = vsel %vm650_vm0, %v2340_v39, 0.0  ;;  %v2682_v11 = vld [vmem:[#allocation6_spill] sm:$0xff] }
  0x8e   : > { %v1290_v51 = vadd.f32 %v1289_v14, %v1288_v23  ;;  %v1301_v15 = vadd.f32 %v1300_v38, %v1299_v24  ;;  %v1253_v13 = vadd.f32 %v1252_v36, %v1251_v18  ;;  %v1293_v7 = vsel %vm650_vm0, %v2358_v50, 0.0  ;;  %v2680_v23 = vld [vmem:[#allocation5_spill] sm:$0xff]  ;;  %v2684_v38 = vld [vmem:[#allocation11_spill] sm:$0xff] }
  0x8f   : > { %v1295_v31 = vsel %vm650_vm0, %v2366_v25, 0.0  ;;  %v1304_v12 = vsel %vm650_vm0, %v2676_v62, 0.0  ;;  %v1281_v3 = vadd.f32 %v1280_v33, %v1279_v22  ;;  %v1297_v19 = vsel %vm650_vm0, %v2374_v26, 0.0  ;;  %v2687_v62 = vld [vmem:[#allocation13_spill] sm:$0xff] }
  0x90   : > { %v1292_v59 = vadd.f32 %v1291_v6, %v1290_v51  ;;  %v1303_v60 = vadd.f32 %v1302_v34, %v1301_v15  ;;  %v1306_v2 = vsel %vm650_vm0, %v2677_v5, 0.0  ;;  %v1314_v39 = vsel %vm650_vm0, %v2382_v55, 0.0  ;;  %v2681_v6 = vld [vmem:[#allocation4_spill] sm:$0xff]  ;;  %v2685_v15 = vld [vmem:[#allocation10_spill] sm:$0xff] }
  0x91   : > { %v1315_v50 = vsel %vm650_vm0, %v2390_v44, 0.0  ;;  %v1317_v25 = vsel %vm650_vm0, %v2398_v43, 0.0  ;;  %v1268_v36 = vadd.f32 %v1267_v29, %v1266_v48  ;;  %v1308_v26 = vsel %vm650_vm0, %v2678_v1, 0.0  ;;  %v2686_v34 = vld [vmem:[#allocation8_spill] sm:$0xff] }
  0x92   : > { %v1294_v46 = vadd.f32 %v1293_v7, %v1292_v59  ;;  %v1305_v37 = vadd.f32 %v1304_v12, %v1303_v60  ;;  %v1316_v4 = vadd.f32 %v1315_v50, %v1314_v39  ;;  %v1310_v61 = vsel %vm650_vm0, %v2679_v47, 0.0  ;;  %v2688_v12 = vld [vmem:[#allocation9_spill] sm:$0xff]  ;;  %v2689_v59 = vld [vmem:[#allocation12_spill] sm:$0xff] }
  0x93   : > { %v1312_v55 = vsel %vm650_vm0, %v2378_v27, 0.0  ;;  %v1319_v44 = vsel %vm650_vm0, %v2406_v49, 0.0  ;;  %v1283_v30 = vadd.f32 %v1282_v0, %v1281_v3  ;;  %v1321_v17 = vsel %vm650_vm0, %v2414_v54, 0.0 }
  0x94   : > { %v1296_v40 = vadd.f32 %v1295_v31, %v1294_v46  ;;  %v1307_v43 = vadd.f32 %v1306_v2, %v1305_v37  ;;  %v1318_v29 = vadd.f32 %v1317_v25, %v1316_v4  ;;  %v1329_v18 = vsel %vm650_vm0, %v2386_v28, 0.0 }
  0x95   : > { %v1330_v32 = vsel %vm650_vm0, %v2394_v53, 0.0  ;;  %v1332_v10 = vsel %vm650_vm0, %v2402_v21, 0.0  ;;  %v1323_v28 = vsel %vm650_vm0, %v2422_v9, 0.0  ;;  %v1325_v53 = vsel %vm650_vm0, %v2433_v16, 0.0  ;;  %v2683_v16 = vld [vmem:[#allocation7_spill] sm:$0xff] }
  0x96   : > { %v1298_v27 = vadd.f32 %v1297_v19, %v1296_v40  ;;  %v1309_v33 = vadd.f32 %v1308_v26, %v1307_v43  ;;  %v1320_v14 = vadd.f32 %v1319_v44, %v1318_v29  ;;  %v1331_v49 = vadd.f32 %v1330_v32, %v1329_v18  ;;  %v2690_v19 = vld [vmem:[#allocation17_spill] sm:$0xff] }
  0x97   : > { %v1334_v21 = vsel %vm650_vm0, %v2410_v52, 0.0  ;;  %v1336_v54 = vsel %vm650_vm0, %v2418_v42, 0.0  ;;  %v1344_v48 = vadd.f32 %v1238_v20, %v2680_v23  ;;  %v1345_v9 = vadd.f32 %v1253_v13, %v2681_v6 }
  0x98   : > { %v1311_v45 = vadd.f32 %v1310_v61, %v1309_v33  ;;  %v1322_v41 = vadd.f32 %v1321_v17, %v1320_v14  ;;  %v1333_v0 = vadd.f32 %v1332_v10, %v1331_v49  ;;  %v1346_v24 = vadd.f32 %v1268_v36, %v2682_v11 }
  0x99   : > { %v1347_v35 = vadd.f32 %v1283_v30, %v2683_v16  ;;  %v1348_v52 = vadd.f32 %v1298_v27, %v2684_v38  ;;  %1352 = vst.msk [vmem:[%s2550_s23] sm:$0xff] %vm650_vm0, %v1344_v48  ;;  %v755_v7 = vadd.f32 %v2686_v34, %v2685_v15  ;;  %v1223_v20 = vmul.f32 %v2239_v58, %v2231_v63 }
  0x9a   : > { %v1313_v22 = vadd.f32 %v1312_v55, %v1311_v45  ;;  %v1324_v51 = vadd.f32 %v1323_v28, %v1322_v41  ;;  %v1335_v42 = vadd.f32 %v1334_v21, %v1333_v0  ;;  %v1327_v13 = vsel %vm650_vm0, %v2441_v56, 0.0  ;;  %1353 = vst.msk [vmem:[%s2550_s23 + $0x8] sm:$0xff] %vm650_vm0, %v1345_v9  ;;  %1354 = vst.msk [vmem:[%s2550_s23 + $0x10] sm:$0xff] %vm650_vm0, %v1346_v24 }
  0x9b   : > { %v1338_v31 = vsel %vm650_vm0, %v2426_v8, 0.0  ;;  %1355 = vst.msk [vmem:[%s2550_s23 + $0x18] sm:$0xff] %vm650_vm0, %v1347_v35  ;;  %1356 = vst.msk [vmem:[%s2550_s23 + $0x20] sm:$0xff] %vm650_vm0, %v1348_v52  ;;  %v768_v3 = vadd.f32 %v2688_v12, %v2687_v62  ;;  %v769_v8 = vsel %vm650_vm0, %v2690_v19, 0.0  ;;  %v1340_v60 = vsel %vm650_vm0, %v2437_v57, 0.0 }
  0x9c   : > { %v1326_v58 = vadd.f32 %v1325_v53, %v1324_v51  ;;  %v1337_v63 = vadd.f32 %v1336_v54, %v1335_v42  ;;  %v1349_v56 = vadd.f32 %v1313_v22, %v2689_v59  ;;  %v1342_v39 = vsel %vm650_vm0, %v1223_v20, 0.0 }
  0x9d   : > { %v770_v50 = vadd.f32 %v769_v8, %v768_v3 }
  0x9e   : > { %v1328_v5 = vadd.f32 %v1327_v13, %v1326_v58  ;;  %v1339_v2 = vadd.f32 %v1338_v31, %v1337_v63  ;;  %1357 = vst.msk [vmem:[%s2550_s23 + $0x28] sm:$0xff] %vm650_vm0, %v1349_v56 }
  0xa0   : > { %v1341_v25 = vadd.f32 %v1340_v60, %v1339_v2  ;;  %v1350_v36 = vadd.f32 %v1328_v5, %v755_v7 }
  0xa2   : > { %v1343_v46 = vadd.f32 %v1342_v39, %v1341_v25  ;;  %1358 = vst.msk [vmem:[%s2550_s23 + $0x30] sm:$0xff] %vm650_vm0, %v1350_v36 }
  0xa4   : > { %v1351_v37 = vadd.f32 %v1343_v46, %v770_v50 }
  0xa6   : > { %1359 = vst.msk [vmem:[%s2550_s23 + $0x38] sm:$0xff] %vm650_vm0, %v1351_v37 }
  0xa7 PF: > { %s12_s11 = sadd.s32 1, %s1548_s11   ;;  %s2691_s9 = smov %s1544_s10 }
  0xa8   : > { %p9_p5 = scmp.ge.s32.totalorder %s12_s11, 4   ;;  %s2692_s10 = smov %s2694_s12 }
  0xaa   :  { %11 = sbr.rel (!%p9_p5) target bundleno = 2 (0x2), region = 62 }

</bundles_post_ra>
